<compile_context>
chip_gen: v7x
topology: tpu7x:2x2x1
jax: 0.10.0
libtpu: 0.0.40
codegen_flags: <defaults>
</compile_context>

<pallas_src>
import functools

import jax
import jax.numpy as jnp
from jax import lax
from jax.experimental import pallas as pl
from jax.experimental.pallas import tpu as pltpu


def _conv_t3d_kernel(p_ref, w_ref, b_ref, o_ref, *, KK, Kd, Dz):
    # p_ref : (1, Dp_pad*KK, M2pad)  resident im2col patch slab (re-used across z)
    # w_ref : (Co2, Kd*KK)           flipped, complex-block-packed weights
    # b_ref : (Co2, 1)
    # o_ref : (1, Dz, Co2, M2pad)    Dz lane-dense output planes per grid step
    zb = pl.program_id(1)
    z0 = zb * Dz
    w = w_ref[...]
    b = b_ref[...]
    KKd = Kd * KK

    def body(i, carry):
        start = (z0 + i) * KK
        if KK % 8 == 0:                      # static Python check (KK is an int)
            start = pl.multiple_of(start, 8)
        rhs = p_ref[0, pl.ds(start, KKd), :]              # (Kd*KK, M2pad)
        acc = jnp.dot(w, rhs, preferred_element_type=jnp.float32) + b
        o_ref[0, i] = acc.astype(o_ref.dtype)
        return carry

    lax.fori_loop(0, Dz, body, 0)


def complex_conv_transpose3d(x_c, w_c, b_c, *, z_block=None):
    """x_c: (N, Cin, D, H, W) complex64; w_c: (Cin, Cout, Kd, Kh, Kw) complex64;
    b_c: (Cout,) complex64. Returns (N, Cout, Do, Ho, Wo) complex64."""
    N, Cin, D, H, W = x_c.shape
    Cin_w, Cout, Kd, Kh, Kw = w_c.shape
    assert Cin == Cin_w
    Do, Ho, Wo = D + Kd - 1, H + Kh - 1, W + Kw - 1
    Dp, Hp, Wp = D + 2 * (Kd - 1), H + 2 * (Kh - 1), W + 2 * (Kw - 1)
    Ci2, Co2 = 2 * Cin, 2 * Cout
    KK = Kh * Kw * Ci2                      # contraction per depth tap
    M2 = (Ho - 1) * Wp + Wo                 # valid + skirt columns per plane
    M2pad = ((M2 + 127) // 128) * 128       # lane-dense / full MXU width

    # Depth tiling: Dz output planes per grid step (2 z-blocks by default so
    # the grid keeps >= 2 parallel units even for N == 1).
    if z_block is None:
        z_block = max(1, (Do + 1) // 2)
    nZb = (Do + z_block - 1) // z_block
    Do_pad = nZb * z_block
    Dp_pad = Do_pad + Kd - 1                # guarantees in-bounds depth slices

    x_re = jnp.real(x_c).astype(jnp.float32)
    x_im = jnp.imag(x_c).astype(jnp.float32)
    k_re = jnp.real(w_c).astype(jnp.float32)
    k_im = jnp.imag(w_c).astype(jnp.float32)
    b_re = jnp.real(b_c).astype(jnp.float32)
    b_im = jnp.imag(b_c).astype(jnp.float32)

    # --- input: stack re/im on channels, zero-pad by K-1, flatten H*W onto
    #     lanes, then hoist the (Kh,Kw) im2col (lane-shifted slices) into the
    #     wrapper so the kernel only does aligned sublane slices + one dot.
    x_cat = jnp.concatenate([x_re, x_im], axis=1)            # (N, Ci2, D, H, W)
    x_pad = jnp.pad(
        x_cat,
        ((0, 0), (0, 0), (Kd - 1, Kd - 1), (Kh - 1, Kh - 1), (Kw - 1, Kw - 1)))
    x_flat = jnp.transpose(x_pad, (0, 2, 1, 3, 4)).reshape(N, Dp, Ci2, Hp * Wp)

    pieces = [x_flat[..., (b * Wp + c):(b * Wp + c) + M2]
              for b in range(Kh) for c in range(Kw)]          # each (N,Dp,Ci2,M2)
    patches = jnp.stack(pieces, axis=2).reshape(N, Dp, KK, M2)
    patches = jnp.pad(
        patches, ((0, 0), (0, Dp_pad - Dp), (0, 0), (0, M2pad - M2)))
    patches = patches.reshape(N, Dp_pad * KK, M2pad)          # flat (depth, tap)

    # --- weights: spatial flip + complex block packing, flattened to one
    #     (Co2, Kd*KK) matrix so the kernel does a single fused dot per plane.
    def flip_pack(k):  # (Cin, Cout, Kd, Kh, Kw) -> (Kd, Kh, Kw, Cin, Cout)
        return jnp.transpose(k[:, :, ::-1, ::-1, ::-1], (2, 3, 4, 0, 1))

    kr = flip_pack(k_re)
    ki = flip_pack(k_im)
    w_big = jnp.concatenate(
        [jnp.concatenate([kr, -ki], axis=-1),     # contribution of x_re
         jnp.concatenate([ki, kr], axis=-1)],     # contribution of x_im
        axis=-2)                                   # (Kd, Kh, Kw, Ci2, Co2)
    w_pack = jnp.transpose(w_big.reshape(Kd * KK, Co2), (1, 0))   # (Co2, Kd*KK)

    # Module bias quirk: re-part gets b_re + b_im, im-part gets b_re - b_im.
    b_col = jnp.concatenate([b_re + b_im, b_re - b_im])[:, None]  # (Co2, 1)

    kernel = functools.partial(_conv_t3d_kernel, KK=KK, Kd=Kd, Dz=z_block)

    out_big = pl.pallas_call(
        kernel,
        out_shape=jax.ShapeDtypeStruct((N, Do_pad, Co2, M2pad), jnp.float32),
        grid_spec=pltpu.PrefetchScalarGridSpec(
            num_scalar_prefetch=0,
            grid=(N, nZb),
            in_specs=[
                # Constant block index along the z axis -> fetched once per n.
                pl.BlockSpec((1, Dp_pad * KK, M2pad), lambda n, zb: (n, 0, 0)),
                pl.BlockSpec((Co2, Kd * KK), lambda n, zb: (0, 0)),
                pl.BlockSpec((Co2, 1), lambda n, zb: (0, 0)),
            ],
            out_specs=pl.BlockSpec((1, z_block, Co2, M2pad),
                                   lambda n, zb: (n, zb, 0, 0)),
        ),
        compiler_params=pltpu.CompilerParams(
            dimension_semantics=("parallel", "parallel"),
            vmem_limit_bytes=32 * 1024 * 1024),
    )(patches, w_pack, b_col)

    # --- unpack: drop padded depth planes, keep first Ho*Wp columns, and drop
    #     the skirt columns (w >= Wo) of each row.
    out_cols = out_big[:, :Do]                                # (N, Do, Co2, M2pad)
    HW = Ho * Wp
    if M2pad >= HW:
        out_hw = out_cols[..., :HW]
    else:
        out_hw = jnp.pad(out_cols, ((0, 0), (0, 0), (0, 0), (0, HW - M2pad)))
    out5 = out_hw.reshape(N, Do, Co2, Ho, Wp)[..., :Wo]       # (N, Do, Co2, Ho, Wo)
    out_re = jnp.transpose(out5[:, :, :Cout], (0, 2, 1, 3, 4))
    out_im = jnp.transpose(out5[:, :, Cout:], (0, 2, 1, 3, 4))
    return lax.complex(out_re, out_im)


def ref_complex_conv_transpose3d(x_c, w_c, b_c):
    """Pure-JAX reference with the exact module semantics (scatter-add form)."""
    N, Cin, D, H, W = x_c.shape
    _, Cout, Kd, Kh, Kw = w_c.shape
    Do, Ho, Wo = D + Kd - 1, H + Kh - 1, W + Kw - 1
    x_re, x_im = jnp.real(x_c), jnp.imag(x_c)
    k_re, k_im = jnp.real(w_c), jnp.imag(w_c)
    b_re, b_im = jnp.real(b_c), jnp.imag(b_c)

    def convT(x, k):
        out = jnp.zeros((N, Cout, Do, Ho, Wo), jnp.float32)
        for a in range(Kd):
            for b in range(Kh):
                for c in range(Kw):
                    contrib = jnp.einsum('nidhw,io->nodhw', x, k[:, :, a, b, c])
                    out = out.at[:, :, a:a + D, b:b + H, c:c + W].add(contrib)
        return out

    re = convT(x_re, k_re) + convT(x_im, k_im) \
        + (b_re + b_im)[None, :, None, None, None]
    im = convT(x_im, k_re) - convT(x_re, k_im) \
        + (b_re - b_im)[None, :, None, None, None]
    return lax.complex(re, im)


if __name__ == "__main__":
    key = jax.random.PRNGKey(0)
    N, Cin, Cout = 2, 4, 4
    D = H = W = 12
    Kd = Kh = Kw = 3

    k1, k2, k3, k4, k5, k6 = jax.random.split(key, 6)

    # Complex input.
    x_c = lax.complex(
        jax.random.normal(k1, (N, Cin, D, H, W), jnp.float32),
        jax.random.normal(k2, (N, Cin, D, H, W), jnp.float32))

    # Kaiming-uniform-style init (transposed-conv weight layout
    # (Cin, Cout/groups, Kd, Kh, Kw); fan_in = Cout*Kd*Kh*Kw, bound = 1/sqrt(fan_in)).
    fan_in = Cout * Kd * Kh * Kw
    bound = 1.0 / (fan_in ** 0.5)
    w_shape = (Cin, Cout, Kd, Kh, Kw)
    w_c = lax.complex(
        jax.random.uniform(k3, w_shape, jnp.float32, -bound, bound),
        jax.random.uniform(k4, w_shape, jnp.float32, -bound, bound))
    b_c = lax.complex(
        jax.random.uniform(k5, (Cout,), jnp.float32, -bound, bound),
        jax.random.uniform(k6, (Cout,), jnp.float32, -bound, bound))

    out = complex_conv_transpose3d(x_c, w_c, b_c)
    out = jax.block_until_ready(out)

    ref = ref_complex_conv_transpose3d(x_c, w_c, b_c)
    assert out.shape == (N, Cout, D + Kd - 1, H + Kh - 1, W + Kw - 1), out.shape
    assert out.dtype == jnp.complex64, out.dtype
    assert jnp.allclose(out, ref, atol=1e-3, rtol=1e-3), (
        float(jnp.max(jnp.abs(out - ref))))

    print("KERNEL_OK")
</pallas_src>

<mosaic_0001>
module attributes {stable_mosaic.version = 11 : i64} {
  func.func @_conv_t3d_kernel(%arg0: i32, %arg1: i32, %arg2: memref<1x1152x256xf32, #tpu.memory_space<vmem>>, %arg3: memref<8x216xf32, #tpu.memory_space<vmem>>, %arg4: memref<8x1xf32, #tpu.memory_space<vmem>>, %arg5: memref<1x7x8x256xf32, #tpu.memory_space<vmem>>) attributes {dimension_semantics = [#tpu.dimension_semantics<parallel>, #tpu.dimension_semantics<parallel>], iteration_bounds = array<i64: 2, 2>, scalar_prefetch = 0 : i64, scratch_operands = 0 : i64, tpu.core_type = #tpu.core_type<tc>, window_params = [{transform_indices = @transform_0, window_bounds = array<i64: 1, 1152, 256>}, {pipeline_mode = #tpu.pipeline_mode<synchronous>, transform_indices = @transform_1, window_bounds = array<i64: 8, 216>}, {pipeline_mode = #tpu.pipeline_mode<synchronous>, transform_indices = @transform_2, window_bounds = array<i64: 8, 1>}, {transform_indices = @transform_3, window_bounds = array<i64: 1, 7, 8, 256>}]} {
    %c7_i32 = arith.constant 7 : i32
    %0 = arith.muli %arg1, %c7_i32 : i32
    %c0 = arith.constant 0 : index
    %c0_0 = arith.constant 0 : index
    %1 = vector.load %arg3[%c0, %c0_0] : memref<8x216xf32, #tpu.memory_space<vmem>>, vector<8x216xf32>
    %c0_1 = arith.constant 0 : index
    %c0_2 = arith.constant 0 : index
    %2 = vector.load %arg4[%c0_1, %c0_2] : memref<8x1xf32, #tpu.memory_space<vmem>>, vector<8x1xf32>
    %c0_i32 = arith.constant 0 : i32
    %c7_i32_3 = arith.constant 7 : i32
    %3 = arith.addi %c0_i32, %c7_i32_3 : i32
    %c1_i32 = arith.constant 1 : i32
    scf.for %arg6 = %c0_i32 to %3 step %c1_i32  : i32 {
      %4 = arith.addi %0, %arg6 : i32
      %c72_i32 = arith.constant 72 : i32
      %5 = arith.muli %4, %c72_i32 : i32
      %6 = tpu.assume_multiple %5, 8 : i32
      %c0_5 = arith.constant 0 : index
      %7 = arith.index_cast %6 : i32 to index
      %c0_6 = arith.constant 0 : index
      %8 = vector.load %arg2[%c0_5, %7, %c0_6] : memref<1x1152x256xf32, #tpu.memory_space<vmem>>, vector<1x216x256xf32>
      %9 = vector.shape_cast %8 : vector<1x216x256xf32> to vector<216x256xf32>
      %cst = arith.constant dense<0.000000e+00> : vector<8x256xf32>
      %10 = tpu.matmul %1, %9, %cst {dimension_numbers = #tpu.dot_dimension_numbers<[1], [0], [0], [1], [0, 0, 1, 1], [], []>} : vector<8x216xf32>, vector<216x256xf32>, vector<8x256xf32> -> vector<8x256xf32>
      %11 = vector.broadcast %2 : vector<8x1xf32> to vector<8x256xf32>
      %12 = arith.addf %10, %11 : vector<8x256xf32>
      %c0_7 = arith.constant 0 : index
      %13 = arith.index_cast %arg6 : i32 to index
      %c0_8 = arith.constant 0 : index
      %c0_9 = arith.constant 0 : index
      %14 = vector.load %arg5[%c0_7, %13, %c0_8, %c0_9] : memref<1x7x8x256xf32, #tpu.memory_space<vmem>>, vector<1x1x8x256xf32>
      %15 = vector.shape_cast %14 : vector<1x1x8x256xf32> to vector<8x256xf32>
      %16 = vector.shape_cast %12 : vector<8x256xf32> to vector<1x1x8x256xf32>
      tpu.vector_store %arg5[%c0_7, %13, %c0_8, %c0_9], %16 {strides = array<i32>} : memref<1x7x8x256xf32, #tpu.memory_space<vmem>>, vector<1x1x8x256xf32>,
    }
    %c7_i32_4 = arith.constant 7 : i32
    return
  }
  func.func @transform_0(%arg0: i32, %arg1: i32) -> (i32, i32, i32) {
    %c0_i32 = arith.constant 0 : i32
    %c0_i32_0 = arith.constant 0 : i32
    %c0_i32_1 = arith.constant 0 : i32
    return %arg0, %c0_i32, %c0_i32_0 : i32, i32, i32
  }
  func.func @transform_1(%arg0: i32, %arg1: i32) -> (i32, i32) {
    %c0_i32 = arith.constant 0 : i32
    %c0_i32_0 = arith.constant 0 : i32
    %c0_i32_1 = arith.constant 0 : i32
    return %c0_i32, %c0_i32_0 : i32, i32
  }
  func.func @transform_2(%arg0: i32, %arg1: i32) -> (i32, i32) {
    %c0_i32 = arith.constant 0 : i32
    %c0_i32_0 = arith.constant 0 : i32
    %c0_i32_1 = arith.constant 0 : i32
    return %c0_i32, %c0_i32_0 : i32, i32
  }
  func.func @transform_3(%arg0: i32, %arg1: i32) -> (i32, i32, i32, i32) {
    %c0_i32 = arith.constant 0 : i32
    %c0_i32_0 = arith.constant 0 : i32
    %c0_i32_1 = arith.constant 0 : i32
    return %arg0, %arg1, %c0_i32, %c0_i32_0 : i32, i32, i32, i32
  }
}

</mosaic_0001>

<bundles_post_ra>
// kernel: tpu_custom_call.1
= control target key start
LH: loop header
LB: loop body
LE: loop exit
PB: predicated region body
PF: predicated region fallthrough
CT: control target
= control target key end

     0   :  { %s1281_s0 = inlined_call_operand.hbm [shape: f32[2,1152,256], index: 0, kind: input, shape index: {}]   ;;  %s1282_s1 = inlined_call_operand.hbm [shape: f32[8,216], index: 1, kind: input, shape index: {}]   ;;  %s1283_s2 = inlined_call_operand.vmem [shape: f32[8,1], index: 2, kind: input, shape index: {}]   ;;  %s1284_s3 = inlined_call_operand.hbm [shape: f32[2,14,8,256], index: 3, kind: output, shape index: {}]  }
   0x1   :  { %1295 = sst [smem:[#allocation15_spill]] %s1282_s1 }
   0x2   :  { %8 = vsyncpa [#allocation3], 0 }
   0x3   :  { %10 = vsyncpa [#allocation3 + $0x1], 0 }
   0x4   :  { %11 = vsyncpa [#allocation6], 0 }
   0x5   :  { %12 = vsyncpa [#allocation4], 0 }
   0x6   :  { %14 = vsyncpa [#allocation4 + $0x1], 0  ;;  %s922_s12 = smov 0   ;;  %s924_s13 = smov 0  }
   0x7   :  { %s926_s14 = smov 0   ;;  %s928_s15 = smov 0  }
   0x8   :  { %s930_s16 = smov 0   ;;  %s932_s17 = smov 0  }
   0x9   :  { %s934_s18 = smov 0   ;;  %s936_s19 = smov 0  }
   0xa   :  { %s938_s20 = smov 0   ;;  %s940_s21 = smov 0  }
   0xb   :  { %s942_s22 = smov 0  }
   0xc LB: > { %1296 = sst [smem:[#allocation11_spill]] %s848_s12  ;;  %s496_s23 = sadd.s32 4294967295, %s888_s22   ;;  %s888_s22 = sphi %s942_s22, %s20_s22   ;;  %s884_s21 = sphi %s940_s21, %s1329_s21   ;;  %s880_s20 = sphi %s938_s20, %s1328_s20   ;;  %s876_s19 = sphi %s936_s19, %s1327_s19   ;;  %s872_s18 = sphi %s934_s18, %s1318_s18   ;;  %s868_s17 = sphi %s932_s17, %s1326_s17   ;;  %s864_s16 = sphi %s930_s16, %s1325_s16   ;;  %s860_s15 = sphi %s928_s15, %s1324_s15   ;;  %s856_s14 = sphi %s926_s14, %s1323_s14   ;;  %s852_s13 = sphi %s924_s13, %s1322_s13   ;;  %s848_s12 = sphi %s922_s12, %s1321_s12  }
   0xd   : > { %1297 = sst [smem:[#allocation12_spill]] %s880_s20  ;;  %s497_s24 = sadd.s32 4294967294, %s888_s22  }
   0xe   : > { %p46_p0 = scmp.ne.s32.totalorder %s868_s17, %s864_s16  ;;  %p47_p1 = scmp.eq.s32.totalorder %s888_s22, 0 }
   0xf   : > { %p52_p2 = scmp.ne.s32.totalorder %s864_s16, %s860_s15  ;;  %p982_p3 = scmp.eq.s32.totalorder %s496_s23, 0 }
  0x10   : > { %p986_p4 = por %p47_p1, %p46_p0  ;;  %p119_p5 = scmp.ne.s32.totalorder %s856_s14, %s852_s13 }
  0x11   : > { %s1298_s26 = scalar_select %p982_p3, 1, 0 }
  0x12   : > { %p994_p6 = por %p982_p3, %p52_p2  ;;  %p120_p7 = scmp.eq.s32.totalorder %s496_s23, 3 }
  0x13   : > { %p125_p8 = scmp.ne.s32.totalorder %s852_s13, %s848_s12  ;;  %p126_p9 = scmp.eq.s32.totalorder %s497_s24, 3 }
  0x14   : > { %s1300_s28 = scalar_select %p994_p6, 1, 0 }
  0x15   : > { %p1000_p10 = por %p120_p7, %p119_p5  ;;  %p498_p11 = scmp.ge.s32.totalorder %s888_s22, 1 }
  0x16   : > { %p1005_p12 = por %p126_p9, %p125_p8  ;;  %p133_p13 = scmp.lt.s32.totalorder %s888_s22, 5 }
  0x17   : > { %s1301_s29 = scalar_select %p1000_p10, 1, 0 }
  0x18   : > { %s1302_s30 = scalar_select %p1005_p12, 1, 0 }
  0x19   : > { %p1010_p0 = pnand %p498_p11, %p133_p13  ;;  %s894_s5 = smov [#allocation5]  }
  0x1a   : > { %1303 = sst [smem:[#allocation13_spill]] %s1302_s30  ;;  %s146_s6 = sshll.u32 %s894_s5, 4  ;;  %s147_s6 = int_to_ptr.vmem [resolvable:$true] %s146_s6 }
  0x1b   : > { %s1304_s4 = scalar_select %p1010_p0, 1, 0 }
  0x1c   : > { %p581_p1 = pneg %p1010_p0  ;;  %p594_p2 = scmp.lt.s32.totalorder %s888_s22, 4 }
  0x1d   : > { %s1307_s1 = sld [smem:[#allocation15_spill]] }
  0x1e   : > { %p1019_p5 = pnand %p581_p1, %p982_p3  ;;  %p1025_p7 = pnand %p594_p2, %p986_p4 }
  0x20   : > { %s1306_s8 = scalar_select %p1025_p7, 1, 0 }
  0x21   : > { %p702_p9 = pneg %p1019_p5 }
  0x23   : > { %s700_s11 = scalar_lea.hbm %s1307_s1, 256 }
  0x24   : > { %p701_p8 = scmp.ne.s32.totalorder %s1307_s1, %s700_s11  ;;  %p707_p1 = scmp.lt.u32.totalorder %s700_s11, %s1307_s1 }
  0x26   : > { %p703_p11 = pnand %p702_p9, %p701_p8 }
  0x28   : > { %p704_p13 = pneg %p703_p11 }
  0x2a   : > { %p709_p4 = pnand %p707_p1, %p704_p13 }
  0x2c   : > { %712 = shalt.err (!%p709_p4)
}
  0x2d   : > { %s713_s27 = scalar_lea.vmem %s147_s6, 256  ;;  %p721_p3 = scmp.lt.s32.totalorder %s147_s6, %s147_s6 }
  0x2e   : > { %p714_p2 = scmp.ne.s32.totalorder %s147_s6, %s713_s27  ;;  %p722_p6 = scmp.lt.s32.totalorder %s713_s27, %s713_s27 }
  0x30   : > { %p716_p12 = pnand %p714_p2, %p702_p9  ;;  %p723_p0 = por %p722_p6, %p721_p3 }
  0x32   : > { %p717_p10 = pneg %p716_p12 }
  0x34   : > { %p724_p7 = pnand %p723_p0, %p717_p10 }
  0x36   : > { %727 = shalt.err (!%p724_p7)
}
  0x37   : > { %584 = dma.hbm_to_vmem [thread:$0]  (!%p1019_p5), %s1307_s1, 256, %s147_s6, [#allocation6]  }
  0x38   : > { %s29_s11 = sadd.s32 1, %s880_s20  ;;  %s32_s15 = sadd.s32 1, %s884_s21 }
  0x39   : > { %p30_p12 = scmp.ge.s32.totalorder %s29_s11, 2  ;;  %s160_s23 = sand.u32 1, %s868_s17  }
  0x3a   : > { %s109_s24 = sadd.s32 1, %s856_s14  ;;  %s568_s7 = smul.u32 2304, %s160_s23 }
  0x3b   : > { %s1331_s11 = smov (%p30_p12, %s29_s11), 0  ;;  %s1333_s15 = smov (!%p30_p12, %s32_s15), %s884_s21 }
  0x3c   : > { %1308 = sst [smem:[#allocation14_spill]] %s1331_s11  ;;  %p34_p3 = scmp.ge.s32.totalorder %s1333_s15, 2 }
  0x3d   : > { %s569_s5 = smul.u32 36864, %s884_s21  ;;  %s105_s27 = ssub.s32 %s880_s20, %s1331_s11 }
  0x3e   : > { %s164_s6 = scalar_lea.vmem [#allocation2], %s568_s7  ;;  %s1335_s15 = smov (%p34_p3, %s1333_s15), 0 }
  0x3f   : > { %s171_s9 = sshll.u32 %s164_s6, 4  ;;  %s1060_s1 = scalar_lea.hbm %s1281_s0, %s569_s5  ;;  %s1064_s9 = int_to_ptr.vmem [resolvable:$true] %s171_s9 }
  0x40   : > { %s36_s30 = ssub.s32 %s884_s21, %s1335_s15  ;;  %s1309_s7 = sadd.s32 1, %s868_s17 }
  0x41   : > { %p37_p6 = scmp.eq.s32.totalorder %s36_s30, 0  ;;  %s106_s11 = sor.u32 %s105_s27, %s36_s30 }
  0x42   : > { %p107_p10 = scmp.eq.s32.totalorder %s106_s11, 0  ;;  %s1074_s12 = scalar_lea.sflag [#allocation3], %s160_s23 }
  0x43   : > { %s1069_s6 = scalar_select %p37_p6, %s868_s17, %s1309_s7  }
  0x44   : > { %s1072_s20 = scalar_select %p107_p10, %s856_s14, %s109_s24  }
  0x45   : > { %s728_s25 = scalar_lea.hbm %s1060_s1, 36864  ;;  %p1310_p5 = scmp.ne.s32.totalorder %s1306_s8, 0 }
  0x46   : > { %p729_p0 = scmp.ne.s32.totalorder %s1060_s1, %s728_s25  ;;  %s733_s30 = scalar_lea.hbm %s1281_s0, 73728 }
  0x47   : > { %p730_p7 = pneg %p1310_p5  ;;  %p734_p11 = scmp.lt.u32.totalorder %s1060_s1, %s1281_s0 }
  0x48   : > { %p735_p13 = scmp.lt.u32.totalorder %s733_s30, %s728_s25  ;;  %p737_p4 = scmp.lt.u32.totalorder %s728_s25, %s1060_s1 }
  0x49   : > { %p731_p8 = pnand %p730_p7, %p729_p0 }
  0x4a   : > { %p736_p1 = por %p735_p13, %p734_p11 }
  0x4b   : > { %p732_p9 = pneg %p731_p8 }
  0x4c   : > { %p738_p2 = por %p737_p4, %p736_p1 }
  0x4e   : > { %p739_p12 = pnand %p738_p2, %p732_p9 }
  0x50   : > { %742 = shalt.err (!%p739_p12)
}
  0x51   : > { %s743_s23 = scalar_lea.vmem %s1064_s9, 36864  ;;  %s895_s24 = smov [#allocation2]  }
  0x52   : > { %p744_p3 = scmp.ne.s32.totalorder %s1064_s9, %s743_s23  ;;  %s748_s7 = sshll.u32 %s895_s24, 4  ;;  %s749_s7 = int_to_ptr.vmem [resolvable:$false] %s748_s7 }
  0x53   : > { %s750_s5 = scalar_lea.vmem %s749_s7, 73728  ;;  %p751_p0 = scmp.lt.s32.totalorder %s1064_s9, %s749_s7 }
  0x54   : > { %p746_p6 = pnand %p744_p3, %p730_p7  ;;  %p752_p8 = scmp.lt.s32.totalorder %s750_s5, %s743_s23 }
  0x56   : > { %p747_p10 = pneg %p746_p6  ;;  %p753_p11 = por %p752_p8, %p751_p0 }
  0x58   : > { %p754_p13 = pnand %p753_p11, %p747_p10 }
  0x5a   : > { %757 = shalt.err (!%p754_p13)
}
  0x5b   : > { %s896_s25 = smov 256   ;;  %s897_s10 = smov 16  }
  0x5c   : > { %588 = dma.hbm_to_vmem [thread:$0]  (!%p1310_p5), %s1060_s1, 36864, %s1064_s9, %s1074_s12, %s896_s25, %s896_s25, %s897_s10  }
  0x5d   : > { %p1311_p7 = scmp.ne.s32.totalorder %s1304_s4, 0 }
  0x5e   : > { %s185_s30 = sand.u32 (!%p1311_p7), 1, %s864_s16   ;;  %p1312_p9 = scmp.ne.s32.totalorder (!%p1311_p7), %s1300_s28, 0 }
  0x5f   : > { %183 = sbr.rel (%p1311_p7) target bundleno = 403 (0x193), region = 32  ;;  %s186_s27 = scalar_lea.sflag (!%p1311_p7), [#allocation3], %s185_s30 }
  0x60   : > { %s1105_s11 = smul.u32 (!%p1311_p7), 2304, %s185_s30 }
  0x62   : > { %s189_s23 = scalar_lea.vmem (!%p1311_p7), [#allocation2], %s1105_s11 }
  0x66   : > { %835 = dma.done.wait (%p1312_p9), %s186_s27, 36864  }
  0x67   : > { %837 = vsyncadd (%p1312_p9), %s186_s27, 4294930432  ;;  %p1313_p1 = scmp.ne.s32.totalorder %s1298_s26, 0 }
  0x69   : > { %839 = dma.done.wait (%p1313_p1), [#allocation6], 256  }
  0x6a   : > { %841 = vsyncadd (%p1313_p1), [#allocation6], 4294967040  ;;  %s213_s1 = sand.u32 1, %s852_s13   ;;  %s217_s12 = smul.u32 7, %s872_s18  ;;  %v1122_v0 = vld [vmem:[#allocation5] sm:$0xff]  ;;  %v1124_v1 = vld [vmem:[#allocation5 + $0x8] sm:$0xff] }
  0x6b   : > { %s1120_s4 = smul.u32 112, %s213_s1  ;;  %v1129_v2 = vld [vmem:[%s1283_s2] sm:$0xff]  ;;  %s1132_s9 = smov 0  }
  0x6d   : > { %s215_s26 = scalar_lea.vmem [#allocation7], %s1120_s4 }
  0x6e LB: >> { %vm293_vm0 = vcmask 719872   ;;  %v898_v3 = vmov 0   ;;  %s227_s24 = sadd.s32 %s892_s9, %s217_s12  ;;  %s514_s30 = sshll.u32 %s892_s9, 4  ;;  %s892_s9 = sphi %s1132_s9, %s226_s9  }
  0x6f   : >> { %506 = vmatprep.mubr.msk.f32.mxu0 %vm293_vm0, %v1124_v1  ;;  %699 = vset.pattern.permute.xlu0 %v898_v3  ;;  %s228_s7 = smul.u32 72, %s227_s24  ;;  %s370_s27 = scalar_lea.vmem %s215_s26, %s514_s30 [#allocation7] }
  0x70   : >> { %290 = vperm.xlu0 %699, %v1129_v2   ;;  %s226_s9 = sadd.s32 1, %s892_s9  }
  0x71   : >> { %s229_s5 = sshra.s32 %s228_s7, 3  ;;  %p223_p5 = scmp.ge.s32.totalorder %s226_s9, 7  }
  0x72   : >> { %s513_s25 = sshll.u32 %s229_s5, 4  ;;  %s515_s28 = smul.u32 (%p223_p5), 14, %s872_s18 }
  0x73   : >> { %s1144_s10 = scalar_lea.vmem %s189_s23, %s513_s25 [#allocation2]  ;;  %s572_s8 = smul.u32 (%p223_p5), 28, %s876_s19 }
  0x74   : >> { %v235_v4 = vld [vmem:[%s1144_s10 + $0x8] sm:$0xff]  ;;  %v237_v5 = vld [vmem:[%s1144_s10 + $0x18] sm:$0xff]  ;;  %v234_v6 = vld [vmem:[%s1144_s10] sm:$0xff]  ;;  %s390_s24 = sshll.u32 (%p223_p5), %s215_s26, 4  ;;  %s1220_s11 = scalar_lea.sflag (%p223_p5), [#allocation4], %s213_s1  ;;  %s1211_s24 = int_to_ptr.vmem [resolvable:$true] %s390_s24 }
  0x75   : >> { %v516_v7 = vpack.c.bf16 %v237_v5, %v235_v4  ;;  %v236_v8 = vld [vmem:[%s1144_s10 + $0x10] sm:$0xff]  ;;  %v239_v9 = vld [vmem:[%s1144_s10 + $0x28] sm:$0xff]  ;;  %v241_v10 = vld [vmem:[%s1144_s10 + $0x38] sm:$0xff]  ;;  %s387_s7 = sadd.s32 (%p223_p5), %s572_s8, %s515_s28  ;;  %s758_s23 = scalar_lea.vmem (%p223_p5), %s1211_s24, 1792 }
  0x76   : >> { %v518_v11 = vpack.c.bf16 %v236_v8, %v234_v6  ;;  %v520_v12 = vpack.c.bf16 %v241_v10, %v239_v9  ;;  %v238_v13 = vld [vmem:[%s1144_s10 + $0x20] sm:$0xff]  ;;  %v240_v14 = vld [vmem:[%s1144_s10 + $0x30] sm:$0xff]  ;;  %v243_v15 = vld [vmem:[%s1144_s10 + $0x48] sm:$0xff]  ;;  %s510_s5 = sshll.u32 (%p223_p5), %s387_s7, 7  ;;  %p759_p4 = scmp.ne.s32.totalorder (%p223_p5), %s1211_s24, %s758_s23 }
  0x77   : >> { %517 = vmatprep.subr.bf16.mxu0 %v516_v7  ;;  %v245_v16 = vld [vmem:[%s1144_s10 + $0x58] sm:$0xff]  ;;  %v522_v17 = vpack.c.bf16 %v240_v14, %v238_v13  ;;  %v242_v19 = vld [vmem:[%s1144_s10 + $0x40] sm:$0xff]  ;;  %v244_v20 = vld [vmem:[%s1144_s10 + $0x50] sm:$0xff]  ;;  %s1216_s9 = scalar_lea.hbm (%p223_p5), %s1284_s3, %s510_s5  ;;  %p1314_p2 = scmp.ne.s32.totalorder (%p223_p5), %s1301_s29, 0 }
  0x78   : >> { %519 = vmatpush1.bf16.msra.mxu0 %v518_v11  ;;  %v524_v18 = vpack.c.bf16 %v245_v16, %v243_v15  ;;  %v247_v21 = vld [vmem:[%s1144_s10 + $0x68] sm:$0xff]  ;;  %v249_v22 = vld [vmem:[%s1144_s10 + $0x78] sm:$0xff]  ;;  %v526_v23 = vpack.c.bf16 %v244_v20, %v242_v19  ;;  %v246_v25 = vld [vmem:[%s1144_s10 + $0x60] sm:$0xff]  ;;  %s899_s18 = smov (%p223_p5), [#allocation7]  }
  0x79   : >> { %521 = vmatprep.subr.bf16.mxu0 %v520_v12  ;;  %v528_v24 = vpack.c.bf16 %v249_v22, %v247_v21  ;;  %v248_v26 = vld [vmem:[%s1144_s10 + $0x70] sm:$0xff]  ;;  %v251_v27 = vld [vmem:[%s1144_s10 + $0x88] sm:$0xff]  ;;  %v253_v28 = vld [vmem:[%s1144_s10 + $0x98] sm:$0xff]  ;;  %p760_p12 = pnand (%p223_p5), %p759_p4, %p1314_p2  ;;  %s762_s19 = sshll.u32 (%p223_p5), %s899_s18, 4  ;;  %s763_s19 = int_to_ptr.vmem [resolvable:$false] %s762_s19 }
  0x7a   : >> { %v530_v29 = vpack.c.bf16 %v248_v26, %v246_v25  ;;  %v532_v30 = vpack.c.bf16 %v253_v28, %v251_v27  ;;  %v250_v31 = vld [vmem:[%s1144_s10 + $0x80] sm:$0xff]  ;;  %v252_v32 = vld [vmem:[%s1144_s10 + $0x90] sm:$0xff]  ;;  %v255_v33 = vld [vmem:[%s1144_s10 + $0xa8] sm:$0xff]  ;;  %s764_s12 = scalar_lea.vmem (%p223_p5), %s763_s19, 3584  ;;  %p765_p6 = scmp.lt.s32.totalorder (%p223_p5), %s1211_s24, %s763_s19 }
  0x7b   : >> { %v257_v34 = vld [vmem:[%s1144_s10 + $0xb8] sm:$0xff]  ;;  %v534_v35 = vpack.c.bf16 %v252_v32, %v250_v31  ;;  %v254_v37 = vld [vmem:[%s1144_s10 + $0xa0] sm:$0xff]  ;;  %v256_v38 = vld [vmem:[%s1144_s10 + $0xb0] sm:$0xff]  ;;  %p761_p3 = pneg (%p223_p5), %p760_p12  ;;  %p766_p10 = scmp.lt.s32.totalorder (%p223_p5), %s764_s12, %s758_s23 }
  0x7c   : >> { %523 = vmatpush1.bf16.msra.mxu0 %v522_v17  ;;  %v536_v36 = vpack.c.bf16 %v257_v34, %v255_v33  ;;  %v259_v39 = vld [vmem:[%s1144_s10 + $0xc8] sm:$0xff]  ;;  %v261_v40 = vld [vmem:[%s1144_s10 + $0xd8] sm:$0xff]  ;;  %v538_v41 = vpack.c.bf16 %v256_v38, %v254_v37  ;;  %v258_v43 = vld [vmem:[%s1144_s10 + $0xc0] sm:$0xff] }
  0x7d   : >> { %525 = vmatprep.subr.bf16.mxu0 %v524_v18  ;;  %v540_v42 = vpack.c.bf16 %v261_v40, %v259_v39  ;;  %v260_v44 = vld [vmem:[%s1144_s10 + $0xd0] sm:$0xff]  ;;  %v263_v45 = vld [vmem:[%s1144_s10 + $0xe8] sm:$0xff]  ;;  %v265_v46 = vld [vmem:[%s1144_s10 + $0xf8] sm:$0xff]  ;;  %p767_p0 = por (%p223_p5), %p766_p10, %p765_p6 }
  0x7e   : >> { %v542_v47 = vpack.c.bf16 %v260_v44, %v258_v43  ;;  %v544_v48 = vpack.c.bf16 %v265_v46, %v263_v45  ;;  %v262_v49 = vld [vmem:[%s1144_s10 + $0xe0] sm:$0xff]  ;;  %v264_v50 = vld [vmem:[%s1144_s10 + $0xf0] sm:$0xff]  ;;  %v267_v51 = vld [vmem:[%s1144_s10 + $0x108] sm:$0xff] }
  0x7f   : >> { %v269_v52 = vld [vmem:[%s1144_s10 + $0x118] sm:$0xff]  ;;  %v546_v53 = vpack.c.bf16 %v264_v50, %v262_v49  ;;  %v266_v55 = vld [vmem:[%s1144_s10 + $0x100] sm:$0xff]  ;;  %v268_v56 = vld [vmem:[%s1144_s10 + $0x110] sm:$0xff]  ;;  %p768_p8 = pnand (%p223_p5), %p767_p0, %p761_p3 }
  0x80   : >> { %527 = vmatpush1.bf16.msra.mxu0 %v526_v23  ;;  %v548_v54 = vpack.c.bf16 %v269_v52, %v267_v51  ;;  %v271_v57 = vld [vmem:[%s1144_s10 + $0x128] sm:$0xff]  ;;  %v273_v58 = vld [vmem:[%s1144_s10 + $0x138] sm:$0xff]  ;;  %v550_v59 = vpack.c.bf16 %v268_v56, %v266_v55  ;;  %v270_v61 = vld [vmem:[%s1144_s10 + $0x120] sm:$0xff] }
  0x81   : >> { %529 = vmatprep.subr.bf16.mxu0 %v528_v24  ;;  %v552_v60 = vpack.c.bf16 %v273_v58, %v271_v57  ;;  %v272_v62 = vld [vmem:[%s1144_s10 + $0x130] sm:$0xff]  ;;  %v275_v63 = vld [vmem:[%s1144_s10 + $0x148] sm:$0xff]  ;;  %v277_v3 = vld [vmem:[%s1144_s10 + $0x158] sm:$0xff] }
  0x82   : >> { %v554_v4 = vpack.c.bf16 %v272_v62, %v270_v61  ;;  %v556_v5 = vpack.c.bf16 %v277_v3, %v275_v63  ;;  %v274_v6 = vld [vmem:[%s1144_s10 + $0x140] sm:$0xff]  ;;  %v276_v7 = vld [vmem:[%s1144_s10 + $0x150] sm:$0xff]  ;;  %v279_v8 = vld [vmem:[%s1144_s10 + $0x168] sm:$0xff] }
  0x83   : >> { %v281_v9 = vld [vmem:[%s1144_s10 + $0x178] sm:$0xff]  ;;  %v558_v10 = vpack.c.bf16 %v276_v7, %v274_v6  ;;  %v278_v12 = vld [vmem:[%s1144_s10 + $0x160] sm:$0xff]  ;;  %v280_v13 = vld [vmem:[%s1144_s10 + $0x170] sm:$0xff] }
  0x84   : >> { %531 = vmatpush1.bf16.msra.mxu0 %v530_v29  ;;  %v560_v11 = vpack.c.bf16 %v281_v9, %v279_v8  ;;  %v283_v14 = vld [vmem:[%s1144_s10 + $0x188] sm:$0xff]  ;;  %v285_v15 = vld [vmem:[%s1144_s10 + $0x198] sm:$0xff]  ;;  %v562_v16 = vpack.c.bf16 %v280_v13, %v278_v12  ;;  %v282_v18 = vld [vmem:[%s1144_s10 + $0x180] sm:$0xff] }
  0x85   : >> { %533 = vmatprep.subr.bf16.mxu0 %v532_v30  ;;  %v564_v17 = vpack.c.bf16 %v285_v15, %v283_v14  ;;  %v284_v19 = vld [vmem:[%s1144_s10 + $0x190] sm:$0xff]  ;;  %v287_v21 = vld [vmem:[%s1144_s10 + $0x1a8] sm:$0xff]  ;;  %v286_v22 = vld [vmem:[%s1144_s10 + $0x1a0] sm:$0xff] }
  0x86   : >> { %v566_v20 = vpack.c.bf16 %v284_v19, %v282_v18 }
  0x88   : >> { %535 = vmatpush1.bf16.msra.mxu0 %v534_v35 }
  0x89   : >> { %537 = vmatprep.subr.bf16.mxu0 %v536_v36 }
  0x8c   : >> { %539 = vmatpush1.bf16.msra.mxu0 %v538_v41 }
  0x8d   : >> { %541 = vmatprep.subr.bf16.mxu0 %v540_v42 }
  0x90   : >> { %543 = vmatpush1.bf16.msra.mxu0 %v542_v47 }
  0x91   : >> { %545 = vmatprep.subr.bf16.mxu0 %v544_v48 }
  0x94   : >> { %547 = vmatpush1.bf16.msra.mxu0 %v546_v53 }
  0x95   : >> { %549 = vmatprep.subr.bf16.mxu0 %v548_v54 }
  0x98   : >> { %551 = vmatpush1.bf16.msra.mxu0 %v550_v59 }
  0x99   : >> { %553 = vmatprep.subr.bf16.mxu0 %v552_v60 }
  0x9c   : >> { %555 = vmatpush1.bf16.msra.mxu0 %v554_v4 }
  0x9d   : >> { %557 = vmatprep.subr.bf16.mxu0 %v556_v5 }
  0xa0   : >> { %559 = vmatpush1.bf16.msra.mxu0 %v558_v10 }
  0xa1   : >> { %561 = vmatprep.subr.bf16.mxu0 %v560_v11 }
  0xa4   : >> { %563 = vmatpush1.bf16.msra.mxu0 %v562_v16 }
  0xa5   : >> { %565 = vmatprep.subr.bf16.mxu0 %v564_v17 }
  0xa8   : >> { %567 = vmatpush1.bf16.msra.mxu0 %v566_v20 }
  0xa9   : >> { %349 = vmatprep.subr.mxu0 %v287_v21 }
  0xac   : >> { %350 = vmatpush1.msra.mxu0 %v286_v22 }
  0xad   : >> { %362 = vmatmul.mubr.f32.vlgmr.msra.gmra.mrb[0].mxu0 %v1122_v0 }
  0xef   : >> { %v291_v23 = vpop.permute.xlu0 %290 }
 0x17e   : > { %225 = sbr.rel (!%p223_p5) target bundleno = 110 (0x6e), region = 90 }
 0x180   : >> { %v363_v24 = vpop.f32.mrb[0].mxu0 }
 0x181   : >> { %v364_v25 = vadd.f32 %v363_v24, %v291_v23  ;;  %v365_v26 = vpop.f32.mrb[1].mxu0 }
 0x182   : >> { %v366_v27 = vadd.f32 %v365_v26, %v291_v23 }
 0x183   : >> { %371 = vst [vmem:[%s370_s27] sm:$0xff] %v364_v25 }
 0x184   : >> { %372 = vst [vmem:[%s370_s27 + $0x8] sm:$0xff] %v366_v27 }
 0x185   : > { %771 = shalt.err (!%p768_p8)
}
 0x186   : > { %s772_s1 = scalar_lea.hbm %s1216_s9, 1792  ;;  %s776_s30 = scalar_lea.hbm %s1284_s3, 7168 }
 0x187   : > { %p773_p11 = scmp.ne.s32.totalorder %s1216_s9, %s772_s1  ;;  %p777_p9 = scmp.lt.u32.totalorder %s1216_s9, %s1284_s3 }
 0x188   : > { %p778_p1 = scmp.lt.u32.totalorder %s776_s30, %s772_s1  ;;  %p780_p4 = scmp.lt.u32.totalorder %s772_s1, %s1216_s9 }
 0x189   : > { %p774_p13 = pnand %p773_p11, %p1314_p2 }
 0x18a   : > { %p779_p5 = por %p778_p1, %p777_p9 }
 0x18b   : > { %p775_p7 = pneg %p774_p13 }
 0x18c   : > { %p781_p12 = por %p780_p4, %p779_p5 }
 0x18e   : > { %p782_p3 = pnand %p781_p12, %p775_p7 }
 0x190   : > { %785 = shalt.err (!%p782_p3)
}
 0x191   : > { %s900_s8 = smov 256   ;;  %s901_s7 = smov 16  }
 0x192   : > { %579 = dma.vmem_to_hbm [thread:$0]  (%p1314_p2), %s1211_s24, 1792, %s1216_s9, %s1220_s11, %s900_s8, %s900_s8, %s901_s7  }
 0x193 PF: > { %s1315_s5 = sld [smem:[#allocation11_spill]]  ;;  %s1316_s25 = sld [smem:[#allocation13_spill]] }
 0x194   : > { %p596_p6 = scmp.ge.s32.totalorder %s888_s22, 2 }
 0x199   : > { %s405_s10 = sand.u32 1, %s1315_s5   ;;  %p1317_p10 = scmp.ne.s32.totalorder %s1316_s25, 0 }
 0x19a   : > { %s406_s23 = scalar_lea.sflag [#allocation4], %s405_s10 }
 0x19b   : > { %p590_p0 = pnand %p596_p6, %p1317_p10 }
 0x19d   : > { %843 = dma.done.wait (!%p590_p0), %s406_s23, 1792  }
 0x19e   : > { %845 = vsyncadd (!%p590_p0), %s406_s23, 4294965504  ;;  %s20_s22 = sadd.s32 1, %s888_s22   ;;  %s1318_s18 = sld [smem:[#allocation12_spill]] }
 0x19f   : > { %p17_p8 = scmp.ge.s32.totalorder %s20_s22, 6   ;;  %s1319_s29 = sld [smem:[#allocation14_spill]] }
 0x1a0   : > { %s1320_s24 = smov %s1335_s15  ;;  %s1321_s12 = smov %s852_s13 }
 0x1a1   : > { %s1322_s13 = smov %s856_s14  ;;  %s1323_s14 = smov %s1072_s20 }
 0x1a2   : > { %s1324_s15 = smov %s864_s16  ;;  %s1325_s16 = smov %s868_s17 }
 0x1a3   : > { %s1326_s17 = smov %s1069_s6  ;;  %s1327_s19 = smov %s884_s21 }
 0x1a4   : > { %s1329_s21 = smov %s1320_s24  ;;  %19 = sbr.rel (!%p17_p8) target bundleno = 12 (0xc), region = 101 }
 0x1a5   : > { %s1328_s20 = smov %s1319_s29 }
 0x1ab   :  { %411 = vsyncpa [#allocation3], 1 }
 0x1ac   :  { %413 = vsyncpa [#allocation3 + $0x1], 1 }
 0x1ad   :  { %414 = vsyncpa [#allocation6], 1 }
 0x1ae   :  { %415 = vsyncpa [#allocation4], 1 }
 0x1af   :  { %417 = vsyncpa [#allocation4 + $0x1], 1 }

</bundles_post_ra>
